<compile_context>
chip_gen: v7x
topology: tpu7x:2x2x1
jax: 0.10.0
libtpu: 0.0.40
codegen_flags: <defaults>
</compile_context>

<pallas_src>
import jax
import jax.numpy as jnp
from jax.experimental import pallas as pl
from jax.experimental.pallas import tpu as pltpu

# ---- hyperparameters (small, deterministic) ---------------------------------
NB_FILTERS = 8          # hyperparams['nb_filters']
KERNEL_SIZE = 2         # hyperparams['kernel_size'] (must be 2, as the module requires)
DILATION = 2            # dilation_factor
IN_CHANNELS = 4
BATCH = 2
SEQ_LEN = 130           # chosen so L_OUT = 128 -> lane-dense (F, 128) output tiles
L_OUT = SEQ_LEN - DILATION * (KERNEL_SIZE - 1)   # == SEQ_LEN - DILATION for K=2


# ---- Pallas kernel: fused taps + GEMM + epilogue, single invocation ----------
def fused_dilated_causal_kernel(x_ref, wb_ref, o_ref):
    """
    x_ref  : (N, C, L)       whole input, PyTorch NCW layout, resident in VMEM
    wb_ref : (2F, 2C + 1)    packed weights; rows 0..F-1 = dilated conv, rows F..2F-1
                             = 1x1 skip; column 2C holds [b1 | b2]
    o_ref  : (N, F, L_OUT)   output in NCW, time on the lane axis (lane-dense)
    """
    C, F = IN_CHANNELS, NB_FILTERS

    # Hoisted weight/bias loads (shared across the unrolled batch loop).
    w_k0 = wb_ref[:, 0:C]                 # (2F, C): [w1[:,:,0] ; 0      ]
    w_k1 = wb_ref[:, C:2 * C]             # (2F, C): [w1[:,:,1] ; w2[:,:,0]]
    bias = wb_ref[:, 2 * C:2 * C + 1]     # (2F, 1): [b1 ; b2], lane-broadcast on add

    for n in range(BATCH):                # static & tiny -> unrolled at trace time
        x_t0 = x_ref[n, :, 0:L_OUT]                        # (C, L_out) tap k=0
        x_t1 = x_ref[n, :, DILATION:DILATION + L_OUT]      # (C, L_out) tap k=1 / skip

        # (2F, L_out) = conv pre-activation (rows 0..F-1) and skip branch (rows F..2F-1)
        y = (jnp.dot(w_k0, x_t0, preferred_element_type=jnp.float32)
             + jnp.dot(w_k1, x_t1, preferred_element_type=jnp.float32)
             + bias)

        y1 = y[0:F, :]                    # dilated conv (+ b1); split at a vreg boundary
        y2 = y[F:2 * F, :]                # 1x1 skip     (+ b2)
        x1 = jnp.where(y1 >= 0.0, y1, 0.1 * y1)            # LeakyReLU(0.1)
        o_ref[n, :, :] = (x1 + y2).astype(o_ref.dtype)     # (8, 128) unmasked stores


# ---- one-time parameter packing (model-init time in a real stack) -------------
def prepare_params(w1_torch, b1, w2_torch, b2):
    """Pack both convs' weights + biases into a single (2F, 2C+1) block.

    w1_torch: (F, C, 2) PyTorch Conv1d weight (cross-correlation, no flip)
    w2_torch: (F, C, 1) PyTorch 1x1 Conv1d weight
    Layout (row = fused output channel, col = contraction index):
        rows 0..F-1  : [ w1[:,:,0] | w1[:,:,1] | b1 ]
        rows F..2F-1 : [     0     | w2[:,:,0] | b2 ]
    """
    C, F = IN_CHANNELS, NB_FILTERS
    top = jnp.concatenate(
        [w1_torch[:, :, 0], w1_torch[:, :, 1], b1.reshape(F, 1)], axis=1)        # (F, 2C+1)
    bot = jnp.concatenate(
        [jnp.zeros((F, C), jnp.float32), w2_torch[:, :, 0], b2.reshape(F, 1)],
        axis=1)                                                                   # (F, 2C+1)
    return jnp.concatenate([top, bot], axis=0)              # (2F, 2C+1) = (16, 9)


# ---- forward wrapper (PyTorch NCW interface; no layout ops outside the kernel) ----
def dilated_causal_conv1d(x_ncw, wb_packed):
    """x_ncw: (N, C, L) float32 (PyTorch layout). Returns (N, F, L - d)."""
    return pl.pallas_call(
        fused_dilated_causal_kernel,
        out_shape=jax.ShapeDtypeStruct((BATCH, NB_FILTERS, L_OUT), jnp.float32),
        in_specs=[
            pl.BlockSpec(memory_space=pltpu.MemorySpace.VMEM),   # whole x, one DMA (~4 KB)
            pl.BlockSpec(memory_space=pltpu.MemorySpace.VMEM),   # packed weights + biases
        ],
        out_specs=pl.BlockSpec(memory_space=pltpu.MemorySpace.VMEM),
    )(x_ncw, wb_packed)                                      # single invocation, no grid


forward = jax.jit(dilated_causal_conv1d)


# ---- pure-JAX reference for verification --------------------------------------
def reference(x_ncw, w1_torch, b1, w2_torch, b2):
    N = x_ncw.shape[0]
    out = jnp.zeros((N, NB_FILTERS, L_OUT), jnp.float32) + b1[None, :, None]
    for k in range(KERNEL_SIZE):
        xs = x_ncw[:, :, k * DILATION: k * DILATION + L_OUT]         # (N, C, L_out)
        out = out + jnp.einsum("ncl,fc->nfl", xs, w1_torch[:, :, k])
    x1 = jnp.where(out >= 0, out, 0.1 * out)
    xs2 = x_ncw[:, :, DILATION:DILATION + L_OUT]
    x2 = jnp.einsum("ncl,fc->nfl", xs2, w2_torch[:, :, 0]) + b2[None, :, None]
    return x1 + x2


if __name__ == "__main__":
    key = jax.random.PRNGKey(0)
    k_x, k_w1, k_w2, k_b1, k_b2 = jax.random.split(key, 5)

    # input, PyTorch NCW layout
    x = jax.random.normal(k_x, (BATCH, IN_CHANNELS, SEQ_LEN), dtype=jnp.float32)

    # deterministic "kaiming normal" init (std = sqrt(2 / fan_in)).
    # The module inits biases to zero; small nonzero biases are used here to exercise
    # the packed-bias path (forward semantics are identical).
    fan_in1 = IN_CHANNELS * KERNEL_SIZE
    w1 = jax.random.normal(k_w1, (NB_FILTERS, IN_CHANNELS, KERNEL_SIZE),
                           dtype=jnp.float32) * jnp.sqrt(2.0 / fan_in1)
    b1 = 0.05 * jax.random.normal(k_b1, (NB_FILTERS,), dtype=jnp.float32)
    fan_in2 = IN_CHANNELS * 1
    w2 = jax.random.normal(k_w2, (NB_FILTERS, IN_CHANNELS, 1),
                           dtype=jnp.float32) * jnp.sqrt(2.0 / fan_in2)
    b2 = 0.05 * jax.random.normal(k_b2, (NB_FILTERS,), dtype=jnp.float32)

    wb = prepare_params(w1, b1, w2, b2)           # done once, as at model init

    out = forward(x, wb)
    out = jax.block_until_ready(out)

    ref = reference(x, w1, b1, w2, b2)
    assert out.shape == (BATCH, NB_FILTERS, L_OUT), out.shape
    assert jnp.allclose(out, ref, atol=1e-5, rtol=1e-5), "mismatch vs reference"

    print("KERNEL_OK")
</pallas_src>

<mosaic_0001>
module attributes {stable_mosaic.version = 11 : i64} {
  func.func @fused_dilated_causal_kernel(%arg0: memref<2x4x130xf32, #tpu.memory_space<vmem>>, %arg1: memref<16x9xf32, #tpu.memory_space<vmem>>, %arg2: memref<2x8x128xf32, #tpu.memory_space<vmem>>) attributes {dimension_semantics = [], scalar_prefetch = 0 : i64, scratch_operands = 0 : i64, tpu.core_type = #tpu.core_type<tc>} {
    %c0 = arith.constant 0 : index
    %c0_0 = arith.constant 0 : index
    %0 = vector.load %arg1[%c0, %c0_0] : memref<16x9xf32, #tpu.memory_space<vmem>>, vector<16x4xf32>
    %c0_1 = arith.constant 0 : index
    %c4 = arith.constant 4 : index
    %1 = vector.load %arg1[%c0_1, %c4] : memref<16x9xf32, #tpu.memory_space<vmem>>, vector<16x4xf32>
    %c0_2 = arith.constant 0 : index
    %c8 = arith.constant 8 : index
    %2 = vector.load %arg1[%c0_2, %c8] : memref<16x9xf32, #tpu.memory_space<vmem>>, vector<16x1xf32>
    %c0_3 = arith.constant 0 : index
    %c0_4 = arith.constant 0 : index
    %c0_5 = arith.constant 0 : index
    %3 = vector.load %arg0[%c0_3, %c0_4, %c0_5] : memref<2x4x130xf32, #tpu.memory_space<vmem>>, vector<1x4x128xf32>
    %4 = vector.shape_cast %3 : vector<1x4x128xf32> to vector<4x128xf32>
    %c0_6 = arith.constant 0 : index
    %c0_7 = arith.constant 0 : index
    %c2 = arith.constant 2 : index
    %5 = vector.load %arg0[%c0_6, %c0_7, %c2] : memref<2x4x130xf32, #tpu.memory_space<vmem>>, vector<1x4x128xf32>
    %6 = vector.shape_cast %5 : vector<1x4x128xf32> to vector<4x128xf32>
    %cst = arith.constant dense<0.000000e+00> : vector<16x128xf32>
    %7 = tpu.matmul %0, %4, %cst {dimension_numbers = #tpu.dot_dimension_numbers<[1], [0], [0], [1], [0, 0, 1, 1], [], []>} : vector<16x4xf32>, vector<4x128xf32>, vector<16x128xf32> -> vector<16x128xf32>
    %cst_8 = arith.constant dense<0.000000e+00> : vector<16x128xf32>
    %8 = tpu.matmul %1, %6, %cst_8 {dimension_numbers = #tpu.dot_dimension_numbers<[1], [0], [0], [1], [0, 0, 1, 1], [], []>} : vector<16x4xf32>, vector<4x128xf32>, vector<16x128xf32> -> vector<16x128xf32>
    %9 = arith.addf %7, %8 : vector<16x128xf32>
    %10 = vector.broadcast %2 : vector<16x1xf32> to vector<16x128xf32>
    %11 = arith.addf %9, %10 : vector<16x128xf32>
    %12 = vector.extract_strided_slice %11 {offsets = [0, 0], sizes = [8, 128], strides = [1, 1]} : vector<16x128xf32> to vector<8x128xf32>
    %13 = vector.extract_strided_slice %11 {offsets = [8, 0], sizes = [8, 128], strides = [1, 1]} : vector<16x128xf32> to vector<8x128xf32>
    %cst_9 = arith.constant 0.000000e+00 : f32
    %14 = vector.broadcast %cst_9 : f32 to vector<8x128xf32>
    %15 = arith.cmpf oge, %12, %14 : vector<8x128xf32>
    %cst_10 = arith.constant 1.000000e-01 : f32
    %16 = vector.broadcast %cst_10 : f32 to vector<8x128xf32>
    %17 = arith.mulf %16, %12 : vector<8x128xf32>
    %18 = arith.select %15, %12, %17 : vector<8x128xi1>, vector<8x128xf32>
    %19 = arith.addf %18, %13 : vector<8x128xf32>
    %c0_11 = arith.constant 0 : index
    %c0_12 = arith.constant 0 : index
    %c0_13 = arith.constant 0 : index
    %20 = vector.load %arg2[%c0_11, %c0_12, %c0_13] : memref<2x8x128xf32, #tpu.memory_space<vmem>>, vector<1x8x128xf32>
    %21 = vector.shape_cast %20 : vector<1x8x128xf32> to vector<8x128xf32>
    %22 = vector.shape_cast %19 : vector<8x128xf32> to vector<1x8x128xf32>
    tpu.vector_store %arg2[%c0_11, %c0_12, %c0_13], %22 {strides = array<i32>} : memref<2x8x128xf32, #tpu.memory_space<vmem>>, vector<1x8x128xf32>,
    %c1 = arith.constant 1 : index
    %c0_14 = arith.constant 0 : index
    %c0_15 = arith.constant 0 : index
    %23 = vector.load %arg0[%c1, %c0_14, %c0_15] : memref<2x4x130xf32, #tpu.memory_space<vmem>>, vector<1x4x128xf32>
    %24 = vector.shape_cast %23 : vector<1x4x128xf32> to vector<4x128xf32>
    %c1_16 = arith.constant 1 : index
    %c0_17 = arith.constant 0 : index
    %c2_18 = arith.constant 2 : index
    %25 = vector.load %arg0[%c1_16, %c0_17, %c2_18] : memref<2x4x130xf32, #tpu.memory_space<vmem>>, vector<1x4x128xf32>
    %26 = vector.shape_cast %25 : vector<1x4x128xf32> to vector<4x128xf32>
    %cst_19 = arith.constant dense<0.000000e+00> : vector<16x128xf32>
    %27 = tpu.matmul %0, %24, %cst_19 {dimension_numbers = #tpu.dot_dimension_numbers<[1], [0], [0], [1], [0, 0, 1, 1], [], []>} : vector<16x4xf32>, vector<4x128xf32>, vector<16x128xf32> -> vector<16x128xf32>
    %cst_20 = arith.constant dense<0.000000e+00> : vector<16x128xf32>
    %28 = tpu.matmul %1, %26, %cst_20 {dimension_numbers = #tpu.dot_dimension_numbers<[1], [0], [0], [1], [0, 0, 1, 1], [], []>} : vector<16x4xf32>, vector<4x128xf32>, vector<16x128xf32> -> vector<16x128xf32>
    %29 = arith.addf %27, %28 : vector<16x128xf32>
    %30 = vector.broadcast %2 : vector<16x1xf32> to vector<16x128xf32>
    %31 = arith.addf %29, %30 : vector<16x128xf32>
    %32 = vector.extract_strided_slice %31 {offsets = [0, 0], sizes = [8, 128], strides = [1, 1]} : vector<16x128xf32> to vector<8x128xf32>
    %33 = vector.extract_strided_slice %31 {offsets = [8, 0], sizes = [8, 128], strides = [1, 1]} : vector<16x128xf32> to vector<8x128xf32>
    %cst_21 = arith.constant 0.000000e+00 : f32
    %34 = vector.broadcast %cst_21 : f32 to vector<8x128xf32>
    %35 = arith.cmpf oge, %32, %34 : vector<8x128xf32>
    %cst_22 = arith.constant 1.000000e-01 : f32
    %36 = vector.broadcast %cst_22 : f32 to vector<8x128xf32>
    %37 = arith.mulf %36, %32 : vector<8x128xf32>
    %38 = arith.select %35, %32, %37 : vector<8x128xi1>, vector<8x128xf32>
    %39 = arith.addf %38, %33 : vector<8x128xf32>
    %c1_23 = arith.constant 1 : index
    %c0_24 = arith.constant 0 : index
    %c0_25 = arith.constant 0 : index
    %40 = vector.load %arg2[%c1_23, %c0_24, %c0_25] : memref<2x8x128xf32, #tpu.memory_space<vmem>>, vector<1x8x128xf32>
    %41 = vector.shape_cast %40 : vector<1x8x128xf32> to vector<8x128xf32>
    %42 = vector.shape_cast %39 : vector<8x128xf32> to vector<1x8x128xf32>
    tpu.vector_store %arg2[%c1_23, %c0_24, %c0_25], %42 {strides = array<i32>} : memref<2x8x128xf32, #tpu.memory_space<vmem>>, vector<1x8x128xf32>,
    return
  }
}

</mosaic_0001>

<bundles_post_ra>
// kernel: dilated_causal_conv1d.1
= control target key start
LH: loop header
LB: loop body
LE: loop exit
PB: predicated region body
PF: predicated region fallthrough
CT: control target
= control target key end

     0   :  { %7 = vsyncpa [#allocation3], 0  ;;  %s645_s0 = inlined_call_operand.hbm [shape: f32[2,4,130], index: 0, kind: input, shape index: {}]   ;;  %s646_s1 = inlined_call_operand.hbm [shape: f32[16,9], index: 1, kind: input, shape index: {}]   ;;  %s647_s2 = inlined_call_operand.hbm [shape: f32[2,8,128], index: 2, kind: output, shape index: {}]  }
   0x1   :  { %8 = vsyncpa [#allocation6], 0 }
   0x2   :  { %9 = vsyncpa [#allocation4], 0  ;;  %s561_s9 = smov [#allocation2]   ;;  %s489_s13 = scalar_lea.hbm %s645_s0, 256 }
   0x3   :  { %s15_s10 = sshll.u32 %s561_s9, 4  ;;  %p490_p0 = scmp.ne.s32.totalorder %s645_s0, %s489_s13  ;;  %s16_s10 = int_to_ptr.vmem [resolvable:$true] %s15_s10 }
   0x4   :  { %p493_p1 = scmp.lt.u32.totalorder %s489_s13, %s645_s0 }
   0x6   :  { %p495_p2 = pnand %p493_p1, %p490_p0 }
   0x8   :  { %498 = shalt.err (!%p495_p2)
}
   0x9   :  { %s499_s18 = scalar_lea.vmem %s16_s10, 256  ;;  %p504_p4 = scmp.lt.s32.totalorder %s16_s10, %s16_s10 }
   0xa   :  { %p500_p3 = scmp.ne.s32.totalorder %s16_s10, %s499_s18  ;;  %p505_p5 = scmp.lt.s32.totalorder %s499_s18, %s499_s18 }
   0xc   :  { %p506_p6 = por %p505_p5, %p504_p4 }
   0xe   :  { %p507_p7 = pnand %p506_p6, %p500_p3 }
  0x10   :  { %510 = shalt.err (!%p507_p7)
}
  0x11   :  { %s562_s19 = smov 128   ;;  %s563_s20 = smov 8  }
  0x12   :  { %21 = dma.hbm_to_vmem [thread:$0]  %s645_s0, 256, %s16_s10, [#allocation3], %s562_s19, %s562_s19, %s563_s20  }
  0x13   :  { %s564_s23 = smov [#allocation5]   ;;  %s511_s27 = scalar_lea.hbm %s646_s1, 256 }
  0x14   :  { %s27_s24 = sshll.u32 %s564_s23, 4  ;;  %p512_p8 = scmp.ne.s32.totalorder %s646_s1, %s511_s27  ;;  %s28_s24 = int_to_ptr.vmem [resolvable:$true] %s27_s24 }
  0x15   :  { %p515_p9 = scmp.lt.u32.totalorder %s511_s27, %s646_s1 }
  0x17   :  { %p517_p10 = pnand %p515_p9, %p512_p8 }
  0x19   :  { %520 = shalt.err (!%p517_p10)
}
  0x1a   :  { %s521_s4 = scalar_lea.vmem %s28_s24, 256  ;;  %p526_p12 = scmp.lt.s32.totalorder %s28_s24, %s28_s24 }
  0x1b   :  { %p522_p11 = scmp.ne.s32.totalorder %s28_s24, %s521_s4  ;;  %p527_p13 = scmp.lt.s32.totalorder %s521_s4, %s521_s4 }
  0x1d   :  { %p528_p0 = por %p527_p13, %p526_p12 }
  0x1f   :  { %p529_p1 = pnand %p528_p0, %p522_p11 }
  0x21   :  { %532 = shalt.err (!%p529_p1)
}
  0x22   :  { %33 = dma.hbm_to_vmem [thread:$0]  %s646_s1, 256, %s28_s24, [#allocation6], %s562_s19, %s562_s19, %s563_s20  }
  0x23   :  { %555 = dma.done.wait [#allocation3], 256  }
  0x24   :  { %556 = vsyncadd [#allocation3], 4294967040 }
  0x25   :  { %557 = dma.done.wait [#allocation6], 256  }
  0x26   :  { %558 = vsyncadd [#allocation6], 4294967040  ;;  %v240_v0 = vld [vmem:[#allocation2 + $0x8] sm:$0xff]  ;;  %v43_v1 = vld [vmem:[#allocation2] sm:$0xff]  ;;  %s565_s6 = smov 126   ;;  %v566_v6 = vmov 8  }
  0x27   :  { %243 = vrot.lane.b32.xlu1 %v240_v0, %s565_s6  ;;  %v242_v2 = vcombine.high %v240_v0, %v240_v0  ;;  %52 = vrot.lane.b32.xlu0 %v43_v1, %s565_s6  ;;  %v51_v3 = vcombine.high %v43_v1, %v43_v1  ;;  %v40_v4 = vld [vmem:[#allocation5] sm:$0xff]  ;;  %v41_v5 = vld [vmem:[#allocation5 + $0x8] sm:$0xff]  ;;  %s567_s7 = smov 124   ;;  %vm56_vm0 = vcmask 1031168   ;;  %vm63_vm1 = vcmask 1043456   ;;  %s568_s1 = smov [#allocation7]  }
  0x28   :  { %486 = vset.pattern.permute.xlu1 %v566_v6  ;;  %485 = vset.pattern.permute.xlu0 %v566_v6  ;;  %v42_v13 = vld [vmem:[#allocation2] sm:$0xf]  ;;  %v239_v14 = vld [vmem:[#allocation2 + $0x8] sm:$0xf]  ;;  %vm58_vm2 = vcmask 31744   ;;  %s416_s8 = sshll.u32 %s568_s1, 4  ;;  %s417_s8 = int_to_ptr.vmem [resolvable:$true] %s416_s8 }
  0x29   :  { %s533_s9 = scalar_lea.vmem %s417_s8, 256  ;;  %p538_p3 = scmp.lt.s32.totalorder %s417_s8, %s417_s8 }
  0x2a   :  { %p534_p2 = scmp.ne.s32.totalorder %s417_s8, %s533_s9  ;;  %p539_p4 = scmp.lt.s32.totalorder %s533_s9, %s533_s9 }
  0x2b   :  { %245 = vrot.lane.b32.xlu1 %v242_v2, %s565_s6  ;;  %54 = vrot.lane.b32.xlu0 %v51_v3, %s565_s6 }
  0x2c   :  { %p540_p5 = por %p539_p4, %p538_p3 }
  0x2e   :  { %p541_p6 = pnand %p540_p5, %p534_p2 }
  0x2f   :  { %46 = vrot.lane.b32.xlu0 %v40_v4, %s567_s7  ;;  %48 = vrot.lane.b32.xlu1 %v41_v5, %s567_s7 }
  0x33   :  { %228 = vperm.xlu1 %486, %v41_v5   ;;  %224 = vperm.xlu0 %485, %v40_v4  }
  0x99   :  { %v244_v7 = vpop.permute.xlu1 %243  ;;  %v53_v8 = vpop.permute.xlu0 %52 }
  0x9d   :  { %v246_v9 = vpop.permute.xlu1 %245  ;;  %v55_v10 = vpop.permute.xlu0 %54 }
  0x9e   :  { %v57_v11 = vsel %vm56_vm0, %v53_v8, %v55_v10  ;;  %v247_v12 = vsel %vm56_vm0, %v244_v7, %v246_v9 }
  0x9f   :  { %453 = vmatprep.subr.msk.mxu0 %vm63_vm1, %v57_v11  ;;  %463 = vmatprep.subr.msk.mxu1 %vm63_vm1, %v247_v12 }
  0xa0   :  { %454 = vmatpush3.msk.msra.mxu0 %vm63_vm1, %v57_v11  ;;  %464 = vmatpush3.msk.msra.mxu1 %vm63_vm1, %v247_v12 }
  0xa1   :  { %v47_v15 = vpop.permute.xlu0 %46  ;;  %458 = vmatprep.subr.msk.mxu0 %vm63_vm1, %v42_v13  ;;  %468 = vmatprep.subr.msk.mxu1 %vm63_vm1, %v239_v14  ;;  %v49_v16 = vpop.permute.xlu1 %48 }
  0xa2   :  { %455 = vmatprep.mubr.msk.f32.mxu0 %vm58_vm2, %v47_v15  ;;  %465 = vmatprep.mubr.msk.f32.mxu1 %vm58_vm2, %v47_v15 }
  0xa3   :  { %456 = vmatmul.mubr.msk.f32.vlgmr.msra.gmra.mrb[0].mxu0 %vm58_vm2, %v49_v16  ;;  %466 = vmatmul.mubr.msk.f32.vlgmr.msra.gmra.mrb[0].mxu1 %vm58_vm2, %v49_v16 }
  0xa4   :  { %459 = vmatpush3.msk.msra.mxu0 %vm63_vm1, %v42_v13  ;;  %469 = vmatpush3.msk.msra.mxu1 %vm63_vm1, %v239_v14 }
  0xa5   :  { %460 = vmatprep.mubr.msk.f32.mxu0 %vm58_vm2, %v40_v4  ;;  %470 = vmatprep.mubr.msk.f32.mxu1 %vm58_vm2, %v40_v4 }
  0xab   :  { %461 = vmatmul.mubr.msk.f32.vlgmr.msra.gmra.mrb[0].mxu0 %vm58_vm2, %v41_v5  ;;  %471 = vmatmul.mubr.msk.f32.vlgmr.msra.gmra.mrb[0].mxu1 %vm58_vm2, %v41_v5 }
  0xb2   :  { %v225_v17 = vpop.permute.xlu0 %224  ;;  %v229_v22 = vpop.permute.xlu1 %228 }
 0x17e   :  { %v462_v18 = vpop.f32.mrb[0].mxu0  ;;  %v472_v19 = vpop.f32.mrb[0].mxu1 }
 0x17f   :  { %v214_v20 = vpop.f32.mrb[1].mxu0  ;;  %v394_v21 = vpop.f32.mrb[1].mxu1  ;;  %v232_v27 = vadd.f32 %v462_v18, %v229_v22  ;;  %v404_v28 = vadd.f32 %v472_v19, %v229_v22 }
 0x180   :  { %v231_v23 = vadd.f32 %v225_v17, %v214_v20  ;;  %v403_v24 = vadd.f32 %v394_v21, %v225_v17 }
 0x182   :  { %vm233_vm3 = vcmp.ge.f32.partialorder %v231_v23, 0.0  ;;  %v234_v25 = vmul.f32 0.1, %v231_v23  ;;  %vm405_vm4 = vcmp.ge.f32.partialorder %v403_v24, 0.0  ;;  %v406_v26 = vmul.f32 0.1, %v403_v24 }
 0x184   :  { %v235_v29 = vsel %vm233_vm3, %v231_v23, %v234_v25  ;;  %v407_v30 = vsel %vm405_vm4, %v403_v24, %v406_v26 }
 0x185   :  { %v236_v31 = vadd.f32 %v235_v29, %v232_v27  ;;  %v408_v32 = vadd.f32 %v407_v30, %v404_v28 }
 0x187   :  { %237 = vst [vmem:[#allocation7] sm:$0xff] %v236_v31  ;;  %410 = vst [vmem:[#allocation7 + $0x8] sm:$0xff] %v408_v32 }
 0x188   :  { %544 = shalt.err (!%p541_p6)
}
 0x189   :  { %s545_s12 = scalar_lea.hbm %s647_s2, 256 }
 0x18a   :  { %p546_p7 = scmp.ne.s32.totalorder %s647_s2, %s545_s12  ;;  %p549_p8 = scmp.lt.u32.totalorder %s545_s12, %s647_s2 }
 0x18c   :  { %p551_p9 = pnand %p549_p8, %p546_p7 }
 0x18e   :  { %554 = shalt.err (!%p551_p9)
}
 0x18f   :  { %422 = dma.vmem_to_hbm [thread:$0]  %s417_s8, 256, %s647_s2, [#allocation4], %s562_s19, %s562_s19, %s563_s20  }
 0x190   :  { %559 = dma.done.wait [#allocation4], 256  }
 0x191   :  { %560 = vsyncadd [#allocation4], 4294967040 }
 0x192   :  { %426 = vsyncpa [#allocation3], 1 }
 0x193   :  { %427 = vsyncpa [#allocation6], 1 }
 0x194   :  { %428 = vsyncpa [#allocation4], 1 }

</bundles_post_ra>
